<compile_context>
chip_gen: v6e
topology: v6e:2x2x1
jax: 0.10.0
libtpu: 0.0.40
codegen_flags: <defaults>
</compile_context>

<pallas_src>
import math

import jax
import jax.numpy as jnp
from jax import lax
from jax.experimental import pallas as pl
from jax.experimental.pallas import tpu as pltpu

EPS = 1e-6
NEG_INF = -1e30          # finite "-inf": avoids inf - inf = NaN on fully-masked rows
LANE = 128


# ---------------------------------------------------------------------------
# In-kernel helpers
# ---------------------------------------------------------------------------
def _layernorm(x, gamma, beta):
    # Matches torch: mean / std with unbiased (ddof=1) variance, divide by (std + EPS).
    h = x.shape[-1]
    mean = jnp.mean(x, axis=-1, keepdims=True)
    var = jnp.sum((x - mean) ** 2, axis=-1, keepdims=True) / (h - 1)
    inv = 1.0 / (jnp.sqrt(var) + EPS)        # per-row reciprocal (S divides, not S*H)
    return gamma * ((x - mean) * inv) + beta


def _mm(a_f32, w_bf16):
    """bf16 operands, f32 MXU accumulation."""
    return jnp.dot(a_f32.astype(jnp.bfloat16), w_bf16,
                   preferred_element_type=jnp.float32)


# ---------------------------------------------------------------------------
# Kernel 1: all transformer layers, hidden state carried in VMEM scratch
# ---------------------------------------------------------------------------
def transformer_layers_kernel(x_ref, mask_ref,
                              g1_ref, be1_ref,
                              wqkv_ref, bqkv_ref,
                              wo_ref, bo_ref,
                              g2_ref, be2_ref,
                              w1_ref, b1_ref,
                              w2_ref, b2_ref,
                              h_out_ref,
                              carry_ref):
    """One (batch block, layer) grid step; hidden state carried in carry_ref."""
    l = pl.program_id(1)
    n_layers = pl.num_programs(1)

    TB, S, H = x_ref.shape
    R = TB * S
    inv_sqrt_s = 1.0 / math.sqrt(S)          # torch scales by sqrt(seq_len)

    # Layer 0: seed the VMEM-resident carry with the embeddings for this block.
    @pl.when(l == 0)
    def _():
        carry_ref[...] = x_ref[...]

    x = carry_ref[...].reshape(R, H)          # flattened rows feed every linear

    # ---- layernorm1 + fused QKV projection --------------------------------
    h1 = _layernorm(x, g1_ref[0], be1_ref[0])
    qkv = _mm(h1, wqkv_ref[0]) + bqkv_ref[0]  # (R, 3H) f32
    q = (qkv[:, :H] * inv_sqrt_s).reshape(TB, S, H)   # fold 1/sqrt(S) into q
    k = qkv[:, H:2 * H].reshape(TB, S, H)
    v = qkv[:, 2 * H:].reshape(TB, S, H)

    # ---- causal self-attention (batched over TB) ---------------------------
    # TODO(synk): for long sequences, tile attention over (tq, tk) blocks with an
    # online-softmax accumulator instead of materializing the full SxS score tile.
    s = jnp.einsum('bqd,bkd->bqk', q.astype(jnp.bfloat16), k.astype(jnp.bfloat16),
                   preferred_element_type=jnp.float32)         # (TB, S, S)
    s = s + mask_ref[...]                     # precomputed additive causal bias
    s = s - jnp.max(s, axis=-1, keepdims=True)
    p = jnp.exp(s)
    p = p * pl.reciprocal(jnp.sum(p, axis=-1, keepdims=True), approx=True)

    ctx = jnp.einsum('bqk,bkd->bqd', p.astype(jnp.bfloat16), v.astype(jnp.bfloat16),
                     preferred_element_type=jnp.float32).reshape(R, H)
    attn_out = _mm(ctx, wo_ref[0]) + bo_ref[0]
    x1 = attn_out + x                         # residual 1

    # ---- layernorm2 + MLP ---------------------------------------------------
    h2 = _layernorm(x1, g2_ref[0], be2_ref[0])
    m = _mm(h2, w1_ref[0]) + b1_ref[0]
    m = jnp.maximum(m, 0.0)                   # ReLU (clamp(min=0))
    m = _mm(m, w2_ref[0]) + b2_ref[0]
    x2 = m + x1                               # residual 2

    carry_ref[...] = x2.reshape(TB, S, H)     # carry for next layer

    # Final hidden state leaves VMEM exactly once per batch block.
    @pl.when(l == n_layers - 1)
    def _():
        h_out_ref[...] = x2.reshape(TB, S, H)


# ---------------------------------------------------------------------------
# Kernel 2: hidden -> vocab projection, tiled over (rows, vocab)
# ---------------------------------------------------------------------------
def vocab_proj_kernel(h_ref, w_ref, b_ref, o_ref):
    # TODO(synk): emit logits in bf16 if downstream consumers allow (halves the
    # largest HBM store); kept f32 here to match the f32 reference check.
    o_ref[...] = (jnp.dot(h_ref[...].astype(jnp.bfloat16), w_ref[...],
                          preferred_element_type=jnp.float32)
                  + b_ref[...]).astype(o_ref.dtype)


# ---------------------------------------------------------------------------
# Tiling / budget helpers
# ---------------------------------------------------------------------------
def _choose_batch_block(B, S):
    """Pick TB dividing B so TB*S rows approach the 256-wide MXU M dimension."""
    target = max(1, -(-256 // S))             # ceil(256 / S)
    tb = min(B, target)
    while B % tb:
        tb -= 1
    return max(tb, 1)


def _largest_divisor(total, candidates):
    for c in candidates:
        if c <= total and total % c == 0:
            return c
    return total


def _clamp_vmem(budget_bytes):
    cap = 100 << 20
    try:                                       # cap to ~80% of physical VMEM if known
        cap = min(cap, int(pltpu.get_tpu_info().vmem_capacity_bytes * 0.8))
    except Exception:
        pass
    return int(max(32 << 20, min(budget_bytes, cap)))


def _layers_vmem_budget(TB, S, H):
    w = 12 * H * H * 2 + 10 * H * 4            # bf16 matmul weights + f32 biases/scales per layer
    act = TB * S * H * 4                       # one (TB*S, H) f32 activation block
    attn = TB * S * (3 * H + 3 * S) * 4        # qkv + score/prob f32 temporaries
    # 2x buffered weights + 2x buffered input + scratch carry + 2x buffered output + temps + mask
    budget = 2 * w + 2 * act + act + 2 * act + attn + S * S * 4
    return _clamp_vmem(int(budget * 1.5))


def _proj_vmem_budget(TM, TN, H):
    budget = 2 * (TM * H * 4 + H * TN * 2 + TN * 4 + TM * TN * 4)
    return _clamp_vmem(int(budget * 1.5))


# ---------------------------------------------------------------------------
# Wrapper
# ---------------------------------------------------------------------------
def transformer_forward(token_ids, emb, stacked, w_out_pad, b_out_pad, vocab):
    # TODO(synk): embedding row-gather is left to XLA (jnp.take); a Pallas DMA
    # gather adds no value at this scale.
    x = jnp.take(emb, token_ids, axis=0).astype(jnp.float32)      # (B, S, H)
    B, S, H = x.shape
    L = stacked["wqkv"].shape[0]
    Vp = w_out_pad.shape[1]

    TB = _choose_batch_block(B, S)
    nb = B // TB

    # Additive causal mask bias, built once on the host (constant index map).
    col = lax.broadcasted_iota(jnp.int32, (S, S), 1)
    row = lax.broadcasted_iota(jnp.int32, (S, S), 0)
    mask_bias = jnp.where(col > row, jnp.float32(NEG_INF), jnp.float32(0.0))

    layer_keys = ("g1", "be1", "wqkv", "bqkv", "wo", "bo",
                  "g2", "be2", "w1", "b1", "w2", "b2")

    def layer_spec(p):                 # stacked (L, ...) -> one layer slice per l
        # TODO(synk): on v7x (64 MiB VMEM) at large H, use pipeline_mode=pl.Buffered(1)
        # on wqkv/w1/w2 (and/or fp8 weights) to trade DMA overlap for VMEM headroom.
        nd = p.ndim
        return pl.BlockSpec((1,) + p.shape[1:],
                            lambda b, l, _nd=nd: (l,) + (0,) * (_nd - 1))

    in_specs = ([pl.BlockSpec((TB, S, H), lambda b, l: (b, 0, 0)),
                 pl.BlockSpec((S, S), lambda b, l: (0, 0))]
                + [layer_spec(stacked[k]) for k in layer_keys])

    hidden = pl.pallas_call(
        transformer_layers_kernel,
        grid=(nb, L),
        in_specs=in_specs,
        out_specs=pl.BlockSpec((TB, S, H), lambda b, l: (b, 0, 0)),
        out_shape=jax.ShapeDtypeStruct((B, S, H), jnp.float32),
        scratch_shapes=[pltpu.VMEM((TB, S, H), jnp.float32)],
        compiler_params=pltpu.CompilerParams(
            dimension_semantics=("parallel", "arbitrary"),
            vmem_limit_bytes=_layers_vmem_budget(TB, S, H)),
    )(x, mask_bias, *[stacked[k] for k in layer_keys])

    # ---- final vocab projection, tiled over (rows, vocab) -------------------
    R = B * S
    h2d = hidden.reshape(R, H)
    TM = _largest_divisor(R, (512, 256, 128, 64, 32, 16, 8))
    TN = _largest_divisor(Vp, (1024, 512, 256, 128))

    logits = pl.pallas_call(
        vocab_proj_kernel,
        grid=(R // TM, Vp // TN),
        in_specs=[pl.BlockSpec((TM, H), lambda i, j: (i, 0)),
                  pl.BlockSpec((H, TN), lambda i, j: (0, j)),
                  pl.BlockSpec((1, TN), lambda i, j: (0, j))],
        out_specs=pl.BlockSpec((TM, TN), lambda i, j: (i, j)),
        out_shape=jax.ShapeDtypeStruct((R, Vp), jnp.float32),
        compiler_params=pltpu.CompilerParams(
            dimension_semantics=("parallel", "parallel"),
            vmem_limit_bytes=_proj_vmem_budget(TM, TN, H)),
    )(h2d, w_out_pad, b_out_pad)

    return logits.reshape(B, S, Vp)[..., :vocab]


# ---------------------------------------------------------------------------
# Deterministic parameter init (mirrors the torch __init__ shapes)
# ---------------------------------------------------------------------------
def init_linear(key, in_dim, out_dim):
    w = jax.random.normal(key, (in_dim, out_dim), jnp.float32) * math.sqrt(2.0 / (in_dim + out_dim))
    b = jnp.zeros((1, out_dim), jnp.float32)
    return w, b


def init_layer(key, H):
    keys = jax.random.split(key, 6)
    g1, be1 = jnp.ones((1, H), jnp.float32), jnp.zeros((1, H), jnp.float32)
    wq, bq = init_linear(keys[0], H, H)
    wk, bk = init_linear(keys[1], H, H)
    wv, bv = init_linear(keys[2], H, H)
    wo, bo = init_linear(keys[3], H, H)
    g2, be2 = jnp.ones((1, H), jnp.float32), jnp.zeros((1, H), jnp.float32)
    w1, b1 = init_linear(keys[4], H, H)
    w2, b2 = init_linear(keys[5], H, H)
    return (g1, be1, wq, bq, wk, bk, wv, bv, wo, bo, g2, be2, w1, b1, w2, b2)


def build_kernel_params(layers_f32, w_out, b_out):
    """Fuse QKV, stack per-layer params along a leading layer axis, pre-cast
    matmul weights to bf16, and pad the vocab projection to a lane-dense width."""
    def fuse(lp):
        (g1, be1, wq, bq, wk, bk, wv, bv, wo, bo, g2, be2, w1, b1, w2, b2) = lp
        return dict(
            g1=g1, be1=be1,
            wqkv=jnp.concatenate([wq, wk, wv], axis=1).astype(jnp.bfloat16),
            bqkv=jnp.concatenate([bq, bk, bv], axis=1),
            wo=wo.astype(jnp.bfloat16), bo=bo,
            g2=g2, be2=be2,
            w1=w1.astype(jnp.bfloat16), b1=b1,
            w2=w2.astype(jnp.bfloat16), b2=b2,
        )
    per_layer = [fuse(lp) for lp in layers_f32]
    stacked = {k: jnp.stack([p[k] for p in per_layer], axis=0) for k in per_layer[0]}

    H, V = w_out.shape
    Vp = ((V + LANE - 1) // LANE) * LANE
    w_out_pad = jnp.zeros((H, Vp), jnp.float32).at[:, :V].set(w_out).astype(jnp.bfloat16)
    b_out_pad = jnp.zeros((1, Vp), jnp.float32).at[:, :V].set(b_out)
    return stacked, w_out_pad, b_out_pad


# ---------------------------------------------------------------------------
# Pure-JAX f32 reference (sanity check for the Pallas kernels)
# ---------------------------------------------------------------------------
def reference_forward(token_ids, emb, layers, w_out, b_out):
    def ln(x, g, b, H):
        mean = jnp.mean(x, axis=-1, keepdims=True)
        std = jnp.sqrt(jnp.sum((x - mean) ** 2, axis=-1, keepdims=True) / (H - 1))
        return g * (x - mean) / (std + EPS) + b

    x = jnp.take(emb, token_ids, axis=0)
    B, S, H = x.shape
    mask = jnp.triu(jnp.ones((S, S), bool), k=1)
    for (g1, be1, wq, bq, wk, bk, wv, bv, wo, bo, g2, be2, w1, b1, w2, b2) in layers:
        h = ln(x, g1, be1, H)
        q = h @ wq + bq
        k = h @ wk + bk
        v = h @ wv + bv
        a = jnp.einsum('bqd,bkd->bqk', q, k) / math.sqrt(S)
        a = jnp.where(mask, -jnp.inf, a)
        a = jax.nn.softmax(a, axis=-1)
        ctx = (a @ v) @ wo + bo
        x1 = ctx + x
        h2 = ln(x1, g2, be2, H)
        m = jnp.maximum(h2 @ w1 + b1, 0.0) @ w2 + b2
        x = m + x1
    return x @ w_out + b_out


# ---------------------------------------------------------------------------
if __name__ == "__main__":
    VOCAB, HIDDEN, NUM_LAYERS = 32, 32, 2
    B, S = 2, 8

    root = jax.random.PRNGKey(0)
    k_emb, k_ids, k_out, *k_layers = jax.random.split(root, 3 + NUM_LAYERS)

    embedding = jax.random.normal(k_emb, (VOCAB, HIDDEN), jnp.float32)
    layers_f32 = [init_layer(k, HIDDEN) for k in k_layers]
    w_out, b_out = init_linear(k_out, HIDDEN, VOCAB)

    token_ids = jax.random.randint(k_ids, (B, S), 0, VOCAB, dtype=jnp.int32)

    stacked, w_out_pad, b_out_pad = build_kernel_params(layers_f32, w_out, b_out)

    logits = transformer_forward(token_ids, embedding, stacked,
                                 w_out_pad, b_out_pad, VOCAB)
    logits = jax.block_until_ready(logits)

    ref = reference_forward(token_ids, embedding, layers_f32, w_out, b_out)
    assert logits.shape == (B, S, VOCAB)
    max_err = float(jnp.max(jnp.abs(logits - ref)))
    # bf16 matmul operands (f32 accumulate) vs. a pure-f32 reference -> mixed-precision tolerance.
    assert jnp.allclose(logits, ref, rtol=5e-2, atol=5e-2), \
        f"mismatch vs reference (max abs err = {max_err})"

    print("KERNEL_OK")
</pallas_src>

<mosaic_0001>
module attributes {stable_mosaic.version = 11 : i64} {
  func.func @transformer_layers_kernel(%arg0: i32, %arg1: i32, %arg2: memref<2x8x32xf32, #tpu.memory_space<vmem>>, %arg3: memref<8x8xf32, #tpu.memory_space<vmem>>, %arg4: memref<1x1x32xf32, #tpu.memory_space<vmem>>, %arg5: memref<1x1x32xf32, #tpu.memory_space<vmem>>, %arg6: memref<1x32x96xbf16, #tpu.memory_space<vmem>>, %arg7: memref<1x1x96xf32, #tpu.memory_space<vmem>>, %arg8: memref<1x32x32xbf16, #tpu.memory_space<vmem>>, %arg9: memref<1x1x32xf32, #tpu.memory_space<vmem>>, %arg10: memref<1x1x32xf32, #tpu.memory_space<vmem>>, %arg11: memref<1x1x32xf32, #tpu.memory_space<vmem>>, %arg12: memref<1x32x32xbf16, #tpu.memory_space<vmem>>, %arg13: memref<1x1x32xf32, #tpu.memory_space<vmem>>, %arg14: memref<1x32x32xbf16, #tpu.memory_space<vmem>>, %arg15: memref<1x1x32xf32, #tpu.memory_space<vmem>>, %arg16: memref<2x8x32xf32, #tpu.memory_space<vmem>>, %arg17: memref<2x8x32xf32, #tpu.memory_space<vmem>>) attributes {dimension_semantics = [#tpu.dimension_semantics<parallel>, #tpu.dimension_semantics<arbitrary>], iteration_bounds = array<i64: 1, 2>, scalar_prefetch = 0 : i64, scratch_operands = 1 : i64, tpu.core_type = #tpu.core_type<tc>, window_params = [{transform_indices = @transform_0, window_bounds = array<i64: 2, 8, 32>}, {pipeline_mode = #tpu.pipeline_mode<synchronous>, transform_indices = @transform_1, window_bounds = array<i64: 8, 8>}, {transform_indices = @transform_2, window_bounds = array<i64: 1, 1, 32>}, {transform_indices = @transform_3, window_bounds = array<i64: 1, 1, 32>}, {transform_indices = @transform_4, window_bounds = array<i64: 1, 32, 96>}, {transform_indices = @transform_5, window_bounds = array<i64: 1, 1, 96>}, {transform_indices = @transform_6, window_bounds = array<i64: 1, 32, 32>}, {transform_indices = @transform_7, window_bounds = array<i64: 1, 1, 32>}, {transform_indices = @transform_8, window_bounds = array<i64: 1, 1, 32>}, {transform_indices = @transform_9, window_bounds = array<i64: 1, 1, 32>}, {transform_indices = @transform_10, window_bounds = array<i64: 1, 32, 32>}, {transform_indices = @transform_11, window_bounds = array<i64: 1, 1, 32>}, {transform_indices = @transform_12, window_bounds = array<i64: 1, 32, 32>}, {transform_indices = @transform_13, window_bounds = array<i64: 1, 1, 32>}, {transform_indices = @transform_14, window_bounds = array<i64: 2, 8, 32>}]} {
    %c0_i32 = arith.constant 0 : i32
    %0 = arith.cmpi eq, %arg1, %c0_i32 : i32
    %1 = arith.extui %0 : i1 to i32
    %c0_i32_0 = arith.constant 0 : i32
    %2 = arith.cmpi ne, %1, %c0_i32_0 : i32
    scf.if %2 {
      %c0_66 = arith.constant 0 : index
      %c0_67 = arith.constant 0 : index
      %c0_68 = arith.constant 0 : index
      %131 = vector.load %arg2[%c0_66, %c0_67, %c0_68] : memref<2x8x32xf32, #tpu.memory_space<vmem>>, vector<2x8x32xf32>
      %c0_69 = arith.constant 0 : index
      %c0_70 = arith.constant 0 : index
      %c0_71 = arith.constant 0 : index
      %132 = vector.load %arg17[%c0_69, %c0_70, %c0_71] : memref<2x8x32xf32, #tpu.memory_space<vmem>>, vector<2x8x32xf32>
      tpu.vector_store %arg17[%c0_69, %c0_70, %c0_71], %131 {strides = array<i32>} : memref<2x8x32xf32, #tpu.memory_space<vmem>>, vector<2x8x32xf32>,
    } else {
    }
    %c0 = arith.constant 0 : index
    %c0_1 = arith.constant 0 : index
    %c0_2 = arith.constant 0 : index
    %3 = vector.load %arg17[%c0, %c0_1, %c0_2] : memref<2x8x32xf32, #tpu.memory_space<vmem>>, vector<2x8x32xf32>
    %4 = vector.shape_cast %3 : vector<2x8x32xf32> to vector<16x32xf32>
    %c0_3 = arith.constant 0 : index
    %c0_4 = arith.constant 0 : index
    %c0_5 = arith.constant 0 : index
    %5 = vector.load %arg4[%c0_3, %c0_4, %c0_5] : memref<1x1x32xf32, #tpu.memory_space<vmem>>, vector<1x1x32xf32>
    %6 = vector.shape_cast %5 : vector<1x1x32xf32> to vector<1x32xf32>
    %c0_6 = arith.constant 0 : index
    %c0_7 = arith.constant 0 : index
    %c0_8 = arith.constant 0 : index
    %7 = vector.load %arg5[%c0_6, %c0_7, %c0_8] : memref<1x1x32xf32, #tpu.memory_space<vmem>>, vector<1x1x32xf32>
    %8 = vector.shape_cast %7 : vector<1x1x32xf32> to vector<1x32xf32>
    %cst = arith.constant dense<0.000000e+00> : vector<16xf32>
    %9 = vector.multi_reduction <add>, %4, %cst [1] : vector<16x32xf32> to vector<16xf32>
    %10 = vector.shape_cast %9 : vector<16xf32> to vector<16x1xf32>
    %cst_9 = arith.constant 3.200000e+01 : f32
    %11 = vector.broadcast %cst_9 : f32 to vector<16x1xf32>
    %12 = arith.divf %10, %11 : vector<16x1xf32>
    %13 = vector.broadcast %12 : vector<16x1xf32> to vector<16x32xf32>
    %14 = arith.subf %4, %13 : vector<16x32xf32>
    %15 = arith.mulf %14, %14 : vector<16x32xf32>
    %cst_10 = arith.constant dense<0.000000e+00> : vector<16xf32>
    %16 = vector.multi_reduction <add>, %15, %cst_10 [1] : vector<16x32xf32> to vector<16xf32>
    %17 = vector.shape_cast %16 : vector<16xf32> to vector<16x1xf32>
    %cst_11 = arith.constant 3.100000e+01 : f32
    %18 = vector.broadcast %cst_11 : f32 to vector<16x1xf32>
    %19 = arith.divf %17, %18 : vector<16x1xf32>
    %20 = math.sqrt %19 : vector<16x1xf32>
    %cst_12 = arith.constant 9.99999997E-7 : f32
    %21 = vector.broadcast %cst_12 : f32 to vector<16x1xf32>
    %22 = arith.addf %20, %21 : vector<16x1xf32>
    %cst_13 = arith.constant 1.000000e+00 : f32
    %23 = vector.broadcast %cst_13 : f32 to vector<16x1xf32>
    %24 = arith.divf %23, %22 : vector<16x1xf32>
    %25 = vector.broadcast %12 : vector<16x1xf32> to vector<16x32xf32>
    %26 = arith.subf %4, %25 : vector<16x32xf32>
    %27 = vector.broadcast %24 : vector<16x1xf32> to vector<16x32xf32>
    %28 = arith.mulf %26, %27 : vector<16x32xf32>
    %29 = vector.broadcast %6 : vector<1x32xf32> to vector<16x32xf32>
    %30 = arith.mulf %29, %28 : vector<16x32xf32>
    %31 = vector.broadcast %8 : vector<1x32xf32> to vector<16x32xf32>
    %32 = arith.addf %30, %31 : vector<16x32xf32>
    %c0_14 = arith.constant 0 : index
    %c0_15 = arith.constant 0 : index
    %c0_16 = arith.constant 0 : index
    %33 = vector.load %arg6[%c0_14, %c0_15, %c0_16] : memref<1x32x96xbf16, #tpu.memory_space<vmem>>, vector<1x32x96xbf16>
    %34 = vector.shape_cast %33 : vector<1x32x96xbf16> to vector<32x96xbf16>
    %35 = arith.truncf %32 : vector<16x32xf32> to vector<16x32xbf16>
    %cst_17 = arith.constant dense<0.000000e+00> : vector<16x96xf32>
    %36 = tpu.matmul %35, %34, %cst_17 {dimension_numbers = #tpu.dot_dimension_numbers<[1], [0], [0], [1], [0, 0, 1, 1], [], []>} : vector<16x32xbf16>, vector<32x96xbf16>, vector<16x96xf32> -> vector<16x96xf32>
    %c0_18 = arith.constant 0 : index
    %c0_19 = arith.constant 0 : index
    %c0_20 = arith.constant 0 : index
    %37 = vector.load %arg7[%c0_18, %c0_19, %c0_20] : memref<1x1x96xf32, #tpu.memory_space<vmem>>, vector<1x1x96xf32>
    %38 = vector.shape_cast %37 : vector<1x1x96xf32> to vector<1x96xf32>
    %39 = vector.broadcast %38 : vector<1x96xf32> to vector<16x96xf32>
    %40 = arith.addf %36, %39 : vector<16x96xf32>
    %41 = vector.extract_strided_slice %40 {offsets = [0, 0], sizes = [16, 32], strides = [1, 1]} : vector<16x96xf32> to vector<16x32xf32>
    %cst_21 = arith.constant 0.353553385 : f32
    %42 = vector.broadcast %cst_21 : f32 to vector<16x32xf32>
    %43 = arith.mulf %41, %42 : vector<16x32xf32>
    %44 = vector.shape_cast %43 : vector<16x32xf32> to vector<2x8x32xf32>
    %45 = vector.extract_strided_slice %40 {offsets = [0, 32], sizes = [16, 32], strides = [1, 1]} : vector<16x96xf32> to vector<16x32xf32>
    %46 = vector.shape_cast %45 : vector<16x32xf32> to vector<2x8x32xf32>
    %47 = vector.extract_strided_slice %40 {offsets = [0, 64], sizes = [16, 32], strides = [1, 1]} : vector<16x96xf32> to vector<16x32xf32>
    %48 = vector.shape_cast %47 : vector<16x32xf32> to vector<2x8x32xf32>
    %49 = arith.truncf %44 : vector<2x8x32xf32> to vector<2x8x32xbf16>
    %50 = arith.truncf %46 : vector<2x8x32xf32> to vector<2x8x32xbf16>
    "tpu.trace_start"() <{level = 10 : i32, message = "bqd,bkd->bqk"}> : () -> ()
    %cst_22 = arith.constant dense<0.000000e+00> : vector<2x8x8xf32>
    %51 = tpu.matmul %49, %50, %cst_22 {dimension_numbers = #tpu.dot_dimension_numbers<[2], [2], [1], [1], [0, 0, 0, 1, 1, 1], [0], [0]>} : vector<2x8x32xbf16>, vector<2x8x32xbf16>, vector<2x8x8xf32> -> vector<2x8x8xf32>
    "tpu.trace_stop"() : () -> ()
    %c0_23 = arith.constant 0 : index
    %c0_24 = arith.constant 0 : index
    %52 = vector.load %arg3[%c0_23, %c0_24] : memref<8x8xf32, #tpu.memory_space<vmem>>, vector<8x8xf32>
    %53 = vector.shape_cast %52 : vector<8x8xf32> to vector<1x8x8xf32>
    %54 = vector.broadcast %53 : vector<1x8x8xf32> to vector<2x8x8xf32>
    %55 = arith.addf %51, %54 : vector<2x8x8xf32>
    %cst_25 = arith.constant dense<0xFF800000> : vector<2x8xf32>
    %56 = vector.multi_reduction <maximumf>, %55, %cst_25 [2] : vector<2x8x8xf32> to vector<2x8xf32>
    %57 = vector.shape_cast %56 : vector<2x8xf32> to vector<2x8x1xf32>
    %58 = vector.broadcast %57 : vector<2x8x1xf32> to vector<2x8x8xf32>
    %59 = arith.subf %55, %58 : vector<2x8x8xf32>
    %60 = math.exp %59 : vector<2x8x8xf32>
    %cst_26 = arith.constant dense<0.000000e+00> : vector<2x8xf32>
    %61 = vector.multi_reduction <add>, %60, %cst_26 [2] : vector<2x8x8xf32> to vector<2x8xf32>
    %62 = vector.shape_cast %61 : vector<2x8xf32> to vector<2x8x1xf32>
    %63 = tpu.reciprocal %62 {approx = true} : vector<2x8x1xf32> -> vector<2x8x1xf32>
    %64 = vector.broadcast %63 : vector<2x8x1xf32> to vector<2x8x8xf32>
    %65 = arith.mulf %60, %64 : vector<2x8x8xf32>
    %66 = arith.truncf %65 : vector<2x8x8xf32> to vector<2x8x8xbf16>
    %67 = arith.truncf %48 : vector<2x8x32xf32> to vector<2x8x32xbf16>
    "tpu.trace_start"() <{level = 10 : i32, message = "bqk,bkd->bqd"}> : () -> ()
    %cst_27 = arith.constant dense<0.000000e+00> : vector<2x8x32xf32>
    %68 = tpu.matmul %66, %67, %cst_27 {dimension_numbers = #tpu.dot_dimension_numbers<[2], [1], [1], [2], [0, 0, 0, 1, 1, 2], [0], [0]>} : vector<2x8x8xbf16>, vector<2x8x32xbf16>, vector<2x8x32xf32> -> vector<2x8x32xf32>
    "tpu.trace_stop"() : () -> ()
    %69 = vector.shape_cast %68 : vector<2x8x32xf32> to vector<16x32xf32>
    %c0_28 = arith.constant 0 : index
    %c0_29 = arith.constant 0 : index
    %c0_30 = arith.constant 0 : index
    %70 = vector.load %arg8[%c0_28, %c0_29, %c0_30] : memref<1x32x32xbf16, #tpu.memory_space<vmem>>, vector<1x32x32xbf16>
    %71 = vector.shape_cast %70 : vector<1x32x32xbf16> to vector<32x32xbf16>
    %72 = arith.truncf %69 : vector<16x32xf32> to vector<16x32xbf16>
    %cst_31 = arith.constant dense<0.000000e+00> : vector<16x32xf32>
    %73 = tpu.matmul %72, %71, %cst_31 {dimension_numbers = #tpu.dot_dimension_numbers<[1], [0], [0], [1], [0, 0, 1, 1], [], []>} : vector<16x32xbf16>, vector<32x32xbf16>, vector<16x32xf32> -> vector<16x32xf32>
    %c0_32 = arith.constant 0 : index
    %c0_33 = arith.constant 0 : index
    %c0_34 = arith.constant 0 : index
    %74 = vector.load %arg9[%c0_32, %c0_33, %c0_34] : memref<1x1x32xf32, #tpu.memory_space<vmem>>, vector<1x1x32xf32>
    %75 = vector.shape_cast %74 : vector<1x1x32xf32> to vector<1x32xf32>
    %76 = vector.broadcast %75 : vector<1x32xf32> to vector<16x32xf32>
    %77 = arith.addf %73, %76 : vector<16x32xf32>
    %78 = arith.addf %77, %4 : vector<16x32xf32>
    %c0_35 = arith.constant 0 : index
    %c0_36 = arith.constant 0 : index
    %c0_37 = arith.constant 0 : index
    %79 = vector.load %arg10[%c0_35, %c0_36, %c0_37] : memref<1x1x32xf32, #tpu.memory_space<vmem>>, vector<1x1x32xf32>
    %80 = vector.shape_cast %79 : vector<1x1x32xf32> to vector<1x32xf32>
    %c0_38 = arith.constant 0 : index
    %c0_39 = arith.constant 0 : index
    %c0_40 = arith.constant 0 : index
    %81 = vector.load %arg11[%c0_38, %c0_39, %c0_40] : memref<1x1x32xf32, #tpu.memory_space<vmem>>, vector<1x1x32xf32>
    %82 = vector.shape_cast %81 : vector<1x1x32xf32> to vector<1x32xf32>
    %cst_41 = arith.constant dense<0.000000e+00> : vector<16xf32>
    %83 = vector.multi_reduction <add>, %78, %cst_41 [1] : vector<16x32xf32> to vector<16xf32>
    %84 = vector.shape_cast %83 : vector<16xf32> to vector<16x1xf32>
    %cst_42 = arith.constant 3.200000e+01 : f32
    %85 = vector.broadcast %cst_42 : f32 to vector<16x1xf32>
    %86 = arith.divf %84, %85 : vector<16x1xf32>
    %87 = vector.broadcast %86 : vector<16x1xf32> to vector<16x32xf32>
    %88 = arith.subf %78, %87 : vector<16x32xf32>
    %89 = arith.mulf %88, %88 : vector<16x32xf32>
    %cst_43 = arith.constant dense<0.000000e+00> : vector<16xf32>
    %90 = vector.multi_reduction <add>, %89, %cst_43 [1] : vector<16x32xf32> to vector<16xf32>
    %91 = vector.shape_cast %90 : vector<16xf32> to vector<16x1xf32>
    %cst_44 = arith.constant 3.100000e+01 : f32
    %92 = vector.broadcast %cst_44 : f32 to vector<16x1xf32>
    %93 = arith.divf %91, %92 : vector<16x1xf32>
    %94 = math.sqrt %93 : vector<16x1xf32>
    %cst_45 = arith.constant 9.99999997E-7 : f32
    %95 = vector.broadcast %cst_45 : f32 to vector<16x1xf32>
    %96 = arith.addf %94, %95 : vector<16x1xf32>
    %cst_46 = arith.constant 1.000000e+00 : f32
    %97 = vector.broadcast %cst_46 : f32 to vector<16x1xf32>
    %98 = arith.divf %97, %96 : vector<16x1xf32>
    %99 = vector.broadcast %86 : vector<16x1xf32> to vector<16x32xf32>
    %100 = arith.subf %78, %99 : vector<16x32xf32>
    %101 = vector.broadcast %98 : vector<16x1xf32> to vector<16x32xf32>
    %102 = arith.mulf %100, %101 : vector<16x32xf32>
    %103 = vector.broadcast %80 : vector<1x32xf32> to vector<16x32xf32>
    %104 = arith.mulf %103, %102 : vector<16x32xf32>
    %105 = vector.broadcast %82 : vector<1x32xf32> to vector<16x32xf32>
    %106 = arith.addf %104, %105 : vector<16x32xf32>
    %c0_47 = arith.constant 0 : index
    %c0_48 = arith.constant 0 : index
    %c0_49 = arith.constant 0 : index
    %107 = vector.load %arg12[%c0_47, %c0_48, %c0_49] : memref<1x32x32xbf16, #tpu.memory_space<vmem>>, vector<1x32x32xbf16>
    %108 = vector.shape_cast %107 : vector<1x32x32xbf16> to vector<32x32xbf16>
    %109 = arith.truncf %106 : vector<16x32xf32> to vector<16x32xbf16>
    %cst_50 = arith.constant dense<0.000000e+00> : vector<16x32xf32>
    %110 = tpu.matmul %109, %108, %cst_50 {dimension_numbers = #tpu.dot_dimension_numbers<[1], [0], [0], [1], [0, 0, 1, 1], [], []>} : vector<16x32xbf16>, vector<32x32xbf16>, vector<16x32xf32> -> vector<16x32xf32>
    %c0_51 = arith.constant 0 : index
    %c0_52 = arith.constant 0 : index
    %c0_53 = arith.constant 0 : index
    %111 = vector.load %arg13[%c0_51, %c0_52, %c0_53] : memref<1x1x32xf32, #tpu.memory_space<vmem>>, vector<1x1x32xf32>
    %112 = vector.shape_cast %111 : vector<1x1x32xf32> to vector<1x32xf32>
    %113 = vector.broadcast %112 : vector<1x32xf32> to vector<16x32xf32>
    %114 = arith.addf %110, %113 : vector<16x32xf32>
    %cst_54 = arith.constant 0.000000e+00 : f32
    %115 = vector.broadcast %cst_54 : f32 to vector<16x32xf32>
    %116 = arith.maximumf %114, %115 : vector<16x32xf32>
    %c0_55 = arith.constant 0 : index
    %c0_56 = arith.constant 0 : index
    %c0_57 = arith.constant 0 : index
    %117 = vector.load %arg14[%c0_55, %c0_56, %c0_57] : memref<1x32x32xbf16, #tpu.memory_space<vmem>>, vector<1x32x32xbf16>
    %118 = vector.shape_cast %117 : vector<1x32x32xbf16> to vector<32x32xbf16>
    %119 = arith.truncf %116 : vector<16x32xf32> to vector<16x32xbf16>
    %cst_58 = arith.constant dense<0.000000e+00> : vector<16x32xf32>
    %120 = tpu.matmul %119, %118, %cst_58 {dimension_numbers = #tpu.dot_dimension_numbers<[1], [0], [0], [1], [0, 0, 1, 1], [], []>} : vector<16x32xbf16>, vector<32x32xbf16>, vector<16x32xf32> -> vector<16x32xf32>
    %c0_59 = arith.constant 0 : index
    %c0_60 = arith.constant 0 : index
    %c0_61 = arith.constant 0 : index
    %121 = vector.load %arg15[%c0_59, %c0_60, %c0_61] : memref<1x1x32xf32, #tpu.memory_space<vmem>>, vector<1x1x32xf32>
    %122 = vector.shape_cast %121 : vector<1x1x32xf32> to vector<1x32xf32>
    %123 = vector.broadcast %122 : vector<1x32xf32> to vector<16x32xf32>
    %124 = arith.addf %120, %123 : vector<16x32xf32>
    %125 = arith.addf %124, %78 : vector<16x32xf32>
    %126 = vector.shape_cast %125 : vector<16x32xf32> to vector<2x8x32xf32>
    %c0_62 = arith.constant 0 : index
    %c0_63 = arith.constant 0 : index
    %c0_64 = arith.constant 0 : index
    %127 = vector.load %arg17[%c0_62, %c0_63, %c0_64] : memref<2x8x32xf32, #tpu.memory_space<vmem>>, vector<2x8x32xf32>
    tpu.vector_store %arg17[%c0_62, %c0_63, %c0_64], %126 {strides = array<i32>} : memref<2x8x32xf32, #tpu.memory_space<vmem>>, vector<2x8x32xf32>,
    %c1_i32 = arith.constant 1 : i32
    %128 = arith.cmpi eq, %arg1, %c1_i32 : i32
    %129 = arith.extui %128 : i1 to i32
    %c0_i32_65 = arith.constant 0 : i32
    %130 = arith.cmpi ne, %129, %c0_i32_65 : i32
    scf.if %130 {
      %131 = vector.shape_cast %125 : vector<16x32xf32> to vector<2x8x32xf32>
      %c0_66 = arith.constant 0 : index
      %c0_67 = arith.constant 0 : index
      %c0_68 = arith.constant 0 : index
      %132 = vector.load %arg16[%c0_66, %c0_67, %c0_68] : memref<2x8x32xf32, #tpu.memory_space<vmem>>, vector<2x8x32xf32>
      tpu.vector_store %arg16[%c0_66, %c0_67, %c0_68], %131 {strides = array<i32>} : memref<2x8x32xf32, #tpu.memory_space<vmem>>, vector<2x8x32xf32>,
    } else {
    }
    return
  }
  func.func @transform_0(%arg0: i32, %arg1: i32) -> (i32, i32, i32) {
    %c0_i32 = arith.constant 0 : i32
    %c0_i32_0 = arith.constant 0 : i32
    %c0_i32_1 = arith.constant 0 : i32
    return %arg0, %c0_i32, %c0_i32_0 : i32, i32, i32
  }
  func.func @transform_1(%arg0: i32, %arg1: i32) -> (i32, i32) {
    %c0_i32 = arith.constant 0 : i32
    %c0_i32_0 = arith.constant 0 : i32
    %c0_i32_1 = arith.constant 0 : i32
    return %c0_i32, %c0_i32_0 : i32, i32
  }
  func.func @transform_2(%arg0: i32, %arg1: i32) -> (i32, i32, i32) {
    %c0_i32 = arith.constant 0 : i32
    %c0_i32_0 = arith.constant 0 : i32
    %c0_i32_1 = arith.constant 0 : i32
    return %arg1, %c0_i32, %c0_i32_0 : i32, i32, i32
  }
  func.func @transform_3(%arg0: i32, %arg1: i32) -> (i32, i32, i32) {
    %c0_i32 = arith.constant 0 : i32
    %c0_i32_0 = arith.constant 0 : i32
    %c0_i32_1 = arith.constant 0 : i32
    return %arg1, %c0_i32, %c0_i32_0 : i32, i32, i32
  }
  func.func @transform_4(%arg0: i32, %arg1: i32) -> (i32, i32, i32) {
    %c0_i32 = arith.constant 0 : i32
    %c0_i32_0 = arith.constant 0 : i32
    %c0_i32_1 = arith.constant 0 : i32
    return %arg1, %c0_i32, %c0_i32_0 : i32, i32, i32
  }
  func.func @transform_5(%arg0: i32, %arg1: i32) -> (i32, i32, i32) {
    %c0_i32 = arith.constant 0 : i32
    %c0_i32_0 = arith.constant 0 : i32
    %c0_i32_1 = arith.constant 0 : i32
    return %arg1, %c0_i32, %c0_i32_0 : i32, i32, i32
  }
  func.func @transform_6(%arg0: i32, %arg1: i32) -> (i32, i32, i32) {
    %c0_i32 = arith.constant 0 : i32
    %c0_i32_0 = arith.constant 0 : i32
    %c0_i32_1 = arith.constant 0 : i32
    return %arg1, %c0_i32, %c0_i32_0 : i32, i32, i32
  }
  func.func @transform_7(%arg0: i32, %arg1: i32) -> (i32, i32, i32) {
    %c0_i32 = arith.constant 0 : i32
    %c0_i32_0 = arith.constant 0 : i32
    %c0_i32_1 = arith.constant 0 : i32
    return %arg1, %c0_i32, %c0_i32_0 : i32, i32, i32
  }
  func.func @transform_8(%arg0: i32, %arg1: i32) -> (i32, i32, i32) {
    %c0_i32 = arith.constant 0 : i32
    %c0_i32_0 = arith.constant 0 : i32
    %c0_i32_1 = arith.constant 0 : i32
    return %arg1, %c0_i32, %c0_i32_0 : i32, i32, i32
  }
  func.func @transform_9(%arg0: i32, %arg1: i32) -> (i32, i32, i32) {
    %c0_i32 = arith.constant 0 : i32
    %c0_i32_0 = arith.constant 0 : i32
    %c0_i32_1 = arith.constant 0 : i32
    return %arg1, %c0_i32, %c0_i32_0 : i32, i32, i32
  }
  func.func @transform_10(%arg0: i32, %arg1: i32) -> (i32, i32, i32) {
    %c0_i32 = arith.constant 0 : i32
    %c0_i32_0 = arith.constant 0 : i32
    %c0_i32_1 = arith.constant 0 : i32
    return %arg1, %c0_i32, %c0_i32_0 : i32, i32, i32
  }
  func.func @transform_11(%arg0: i32, %arg1: i32) -> (i32, i32, i32) {
    %c0_i32 = arith.constant 0 : i32
    %c0_i32_0 = arith.constant 0 : i32
    %c0_i32_1 = arith.constant 0 : i32
    return %arg1, %c0_i32, %c0_i32_0 : i32, i32, i32
  }
  func.func @transform_12(%arg0: i32, %arg1: i32) -> (i32, i32, i32) {
    %c0_i32 = arith.constant 0 : i32
    %c0_i32_0 = arith.constant 0 : i32
    %c0_i32_1 = arith.constant 0 : i32
    return %arg1, %c0_i32, %c0_i32_0 : i32, i32, i32
  }
  func.func @transform_13(%arg0: i32, %arg1: i32) -> (i32, i32, i32) {
    %c0_i32 = arith.constant 0 : i32
    %c0_i32_0 = arith.constant 0 : i32
    %c0_i32_1 = arith.constant 0 : i32
    return %arg1, %c0_i32, %c0_i32_0 : i32, i32, i32
  }
  func.func @transform_14(%arg0: i32, %arg1: i32) -> (i32, i32, i32) {
    %c0_i32 = arith.constant 0 : i32
    %c0_i32_0 = arith.constant 0 : i32
    %c0_i32_1 = arith.constant 0 : i32
    return %arg0, %c0_i32, %c0_i32_0 : i32, i32, i32
  }
}

</mosaic_0001>

<bundles_post_ra>
// kernel: tpu_custom_call.1
= control target key start
LH: loop header
LB: loop body
LE: loop exit
PB: predicated region body
PF: predicated region fallthrough
CT: control target
= control target key end

     0   :  { %s2623_s0 = inlined_call_operand.hbm [shape: f32[2,8,32], index: 0, kind: input, shape index: {}]   ;;  %s2624_s1 = inlined_call_operand.hbm [shape: f32[8,8], index: 1, kind: input, shape index: {}]   ;;  %s2625_s2 = inlined_call_operand.vmem [shape: f32[2,1,32], index: 2, kind: input, shape index: {}]   ;;  %s2626_s3 = inlined_call_operand.vmem [shape: f32[2,1,32], index: 3, kind: input, shape index: {}]   ;;  %s2627_s4 = inlined_call_operand.hbm [shape: bf16[2,32,96], index: 4, kind: input, shape index: {}]   ;;  %s2628_s5 = inlined_call_operand.vmem [shape: f32[2,1,96], index: 5, kind: input, shape index: {}]   ;;  %s2629_s6 = inlined_call_operand.hbm [shape: bf16[2,32,32], index: 6, kind: input, shape index: {}]   ;;  %s2630_s7 = inlined_call_operand.vmem [shape: f32[2,1,32], index: 7, kind: input, shape index: {}]   ;;  %s2631_s8 = inlined_call_operand.vmem [shape: f32[2,1,32], index: 8, kind: input, shape index: {}]   ;;  %s2632_s9 = inlined_call_operand.vmem [shape: f32[2,1,32], index: 9, kind: input, shape index: {}]   ;;  %s2633_s10 = inlined_call_operand.hbm [shape: bf16[2,32,32], index: 10, kind: input, shape index: {}]   ;;  %s2634_s11 = inlined_call_operand.vmem [shape: f32[2,1,32], index: 11, kind: input, shape index: {}]   ;;  %s2635_s12 = inlined_call_operand.hbm [shape: bf16[2,32,32], index: 12, kind: input, shape index: {}]   ;;  %s2636_s13 = inlined_call_operand.vmem [shape: f32[2,1,32], index: 13, kind: input, shape index: {}]   ;;  %s2637_s14 = inlined_call_operand.hbm [shape: f32[2,8,32], index: 14, kind: output, shape index: {}]  }
   0x1   :  { %2641 = sst [smem:[#allocation20_spill]] %s2623_s0 }
   0x2   :  { %2642 = sst [smem:[#allocation21_spill]] %s2624_s1 }
   0x3   :  { %2643 = sst [smem:[#allocation22_spill]] %s2627_s4 }
   0x4   :  { %2644 = sst [smem:[#allocation23_spill]] %s2628_s5 }
   0x5   :  { %2645 = sst [smem:[#allocation24_spill]] %s2629_s6 }
   0x6   :  { %2646 = sst [smem:[#allocation25_spill]] %s2630_s7 }
   0x7   :  { %2647 = sst [smem:[#allocation26_spill]] %s2631_s8 }
   0x8   :  { %2648 = sst [smem:[#allocation27_spill]] %s2632_s9 }
   0x9   :  { %2649 = sst [smem:[#allocation28_spill]] %s2633_s10 }
   0xa   :  { %2650 = sst [smem:[#allocation29_spill]] %s2634_s11 }
   0xb   :  { %2651 = sst [smem:[#allocation30_spill]] %s2635_s12 }
   0xc   :  { %2652 = sst [smem:[#allocation31_spill]] %s2636_s13 }
   0xd   :  { %2653 = sst [smem:[#allocation32_spill]] %s2637_s14 }
   0xe   :  { %19 = vsyncpa [#allocation4], 0 }
   0xf   :  { %20 = vsyncpa [#allocation7], 0 }
  0x10   :  { %21 = vsyncpa [#allocation5], 0  ;;  %s2241_s29 = smov 0   ;;  %s2243_s30 = smov 0  }
  0x11   :  { %s2245_s15 = smov 0   ;;  %s2247_s16 = smov 0  }
  0x12   :  { %s2249_s17 = smov 0   ;;  %s2251_s18 = smov 0  }
  0x13 LB: > { %2654 = sst [smem:[#allocation17_spill]] %s2143_s17  ;;  %s2270_s19 = sadd.s32 4294967295, %s2147_s18   ;;  %s2147_s18 = sphi %s2251_s18, %s27_s18   ;;  %s2143_s17 = sphi %s2249_s17, %s2692_s17   ;;  %s2139_s16 = sphi %s2247_s16, %s2691_s16   ;;  %s2135_s15 = sphi %s2245_s15, %s2695_s15   ;;  %s2131_s30 = sphi %s2243_s30, %s2694_s30   ;;  %s2127_s29 = sphi %s2241_s29, %s2693_s29  }
  0x14   : > { %p152_p0 = scmp.ne.s32.totalorder %s2135_s15, %s2131_s30  ;;  %p153_p1 = scmp.eq.s32.totalorder %s2147_s18, 0 }
  0x15   : > { %p158_p2 = scmp.ne.s32.totalorder %s2131_s30, %s2127_s29  ;;  %p2638_p3 = scmp.eq.s32.totalorder %s2270_s19, 0 }
  0x16   : > { %p154_p4 = por %p153_p1, %p152_p0  ;;  %p1624_p5 = scmp.ge.s32.totalorder %s2147_s18, 1 }
  0x17   : > { %p2281_p6 = por %p2638_p3, %p158_p2  ;;  %p429_p7 = scmp.lt.s32.totalorder %s2147_s18, 3 }
  0x18   : > { %s2149_s23 = smov [#allocation3]   ;;  %p1799_p10 = scmp.lt.s32.totalorder %s2147_s18, 2 }
  0x19   : > { %p2286_p8 = pnand %p1624_p5, %p429_p7  ;;  %s444_s24 = sshll.u32 %s2149_s23, 4  ;;  %s445_s24 = int_to_ptr.vmem [resolvable:$true] %s444_s24 }
  0x1a   : > { %p2299_p12 = pnand %p1799_p10, %p154_p4  ;;  %s36_s27 = sadd.s32 1, %s2143_s17 }
  0x1b   : > { %p1777_p9 = pneg %p2286_p8  ;;  %s1908_s28 = scalar_lea.vmem %s445_s24, 256 }
  0x1c   : > { %p1909_p0 = scmp.ne.s32.totalorder %s445_s24, %s1908_s28  ;;  %p1916_p5 = scmp.lt.s32.totalorder %s445_s24, %s445_s24 }
  0x1d   : > { %p2295_p11 = pnand %p1777_p9, %p2638_p3  ;;  %p1917_p7 = scmp.lt.s32.totalorder %s1908_s28, %s1908_s28 }
  0x1f   : > { %p1899_p13 = pneg %p2295_p11  ;;  %p1918_p9 = por %p1917_p7, %p1916_p5 }
  0x21   : > { %p1911_p1 = pnand %p1909_p0, %p1899_p13 }
  0x23   : > { %p1912_p2 = pneg %p1911_p1 }
  0x25   : > { %p1919_p3 = pnand %p1918_p9, %p1912_p2 }
  0x27   : > { %1922 = shalt.err (!%p1919_p3)
}
  0x28   : > { %s2150_s29 = smov 128   ;;  %s2151_s23 = smov 8  }
  0x29   : > { %s2659_s0 = sld [smem:[#allocation20_spill]]  ;;  %p37_p4 = scmp.ge.s32.totalorder %s36_s27, 2 }
  0x2a   : > { %s481_s28 = sand.u32 1, %s2147_s18   ;;  %s483_s13 = sand.u32 1, %s2135_s15  }
  0x2b   : > { %s2697_s27 = smov (%p37_p4, %s36_s27), 0  ;;  %s2318_s11 = sshll.u32 %s483_s13, 4 }
  0x2c   : > { %2660 = sst [smem:[#allocation18_spill]] %s2697_s27  ;;  %s142_s9 = ssub.s32 %s2143_s17, %s2697_s27 }
  0x2d   : > { %p143_p3 = scmp.eq.s32.totalorder %s142_s9, 0  ;;  %s2323_s8 = sshll.u32 %s2143_s17, 8 }
  0x2e   : > { %s2661_s4 = sld [smem:[#allocation22_spill]]  ;;  %s485_s20 = scalar_lea.vmem [#allocation8], %s2318_s11 }
  0x2f   : > { %1780 = dma.hbm_to_vmem [thread:$0]  (!%p2295_p11), %s2659_s0, 256, %s445_s24, [#allocation4], %s2150_s29, %s2150_s29, %s2151_s23  }
  0x30   : > { %s492_s24 = sshll.u32 %s485_s20, 4  ;;  %s2662_s29 = sadd.s32 1, %s2135_s15  ;;  %s493_s24 = int_to_ptr.vmem [resolvable:$true] %s492_s24 }
  0x31   : > { %s2333_s23 = scalar_select %p143_p3, %s2135_s15, %s2662_s29  }
  0x32   : > { %s2335_s0 = scalar_lea.sflag [#allocation4], %s481_s28  ;;  %p1925_p10 = pneg %p2299_p12 }
  0x33   : > { %2663 = sst [smem:[#allocation19_spill]] %s2333_s23  ;;  %s1936_s13 = scalar_lea.vmem %s493_s24, 256 }
  0x34   : > { %s491_s14 = scalar_lea.hbm %s2661_s4, %s2323_s8  ;;  %p1937_p0 = scmp.ne.s32.totalorder %s493_s24, %s1936_s13 }
  0x35   : > { %s2152_s9 = smov [#allocation8]  }
  0x36   : > { %p1939_p1 = pnand %p1937_p0, %p1925_p10  ;;  %s1941_s27 = sshll.u32 %s2152_s9, 4  ;;  %s1942_s27 = int_to_ptr.vmem [resolvable:$false] %s1941_s27 }
  0x37   : > { %s1943_s5 = scalar_lea.vmem %s1942_s27, 512  ;;  %p1944_p5 = scmp.lt.s32.totalorder %s493_s24, %s1942_s27 }
  0x38   : > { %p1940_p2 = pneg %p1939_p1  ;;  %p1945_p7 = scmp.lt.s32.totalorder %s1943_s5, %s1936_s13 }
  0x3a   : > { %p1946_p9 = por %p1945_p7, %p1944_p5 }
  0x3c   : > { %p1947_p4 = pnand %p1946_p9, %p1940_p2 }
  0x3e   : > { %1950 = shalt.err (!%p1947_p4)
}
  0x3f   : > { %s2153_s7 = smov 64   ;;  %s2154_s28 = smov 4  }
  0x40   : > { %1787 = dma.hbm_to_vmem [thread:$0]  (!%p2299_p12), %s491_s14, 256, %s493_s24, %s2335_s0, %s2153_s7, %s2153_s7, %s2154_s28  }
  0x41   : > { %s2664_s6 = sld [smem:[#allocation24_spill]]  ;;  %s512_s13 = scalar_lea.vmem [#allocation9], %s2318_s11 }
  0x42   : > { %s519_s9 = sshll.u32 %s512_s13, 4  ;;  %s2155_s4 = smov [#allocation9]   ;;  %s520_s9 = int_to_ptr.vmem [resolvable:$true] %s519_s9 }
  0x43   : > { %s1964_s5 = scalar_lea.vmem %s520_s9, 256  ;;  %s1969_s17 = sshll.u32 %s2155_s4, 4  ;;  %s1970_s17 = int_to_ptr.vmem [resolvable:$false] %s1969_s17 }
  0x44   : > { %p1965_p3 = scmp.ne.s32.totalorder %s520_s9, %s1964_s5  ;;  %s1971_s23 = scalar_lea.vmem %s1970_s17, 512 }
  0x45   : > { %p1972_p2 = scmp.lt.s32.totalorder %s520_s9, %s1970_s17  ;;  %p1973_p5 = scmp.lt.s32.totalorder %s1971_s23, %s1964_s5 }
  0x46   : > { %p1967_p0 = pnand %p1965_p3, %p1925_p10 }
  0x47   : > { %s518_s27 = scalar_lea.hbm %s2664_s6, %s2323_s8  ;;  %p1974_p7 = por %p1973_p5, %p1972_p2 }
  0x48   : > { %p1968_p1 = pneg %p1967_p0 }
  0x4a   : > { %p1975_p9 = pnand %p1974_p7, %p1968_p1 }
  0x4c   : > { %1978 = shalt.err (!%p1975_p9)
}
  0x4d   : > { %1790 = dma.hbm_to_vmem [thread:$0]  (!%p2299_p12), %s518_s27, 256, %s520_s9, %s2335_s0, %s2153_s7, %s2153_s7, %s2154_s28  }
  0x4e   : > { %s2665_s10 = sld [smem:[#allocation28_spill]]  ;;  %s551_s20 = scalar_lea.vmem [#allocation10], %s2318_s11 }
  0x4f   : > { %s558_s17 = sshll.u32 %s551_s20, 4  ;;  %s2156_s29 = smov [#allocation10]   ;;  %s559_s17 = int_to_ptr.vmem [resolvable:$true] %s558_s17 }
  0x50   : > { %s1992_s23 = scalar_lea.vmem %s559_s17, 256  ;;  %s1997_s13 = sshll.u32 %s2156_s29, 4  ;;  %s1998_s13 = int_to_ptr.vmem [resolvable:$false] %s1997_s13 }
  0x51   : > { %p1993_p4 = scmp.ne.s32.totalorder %s559_s17, %s1992_s23  ;;  %s1999_s5 = scalar_lea.vmem %s1998_s13, 512 }
  0x52   : > { %p2000_p1 = scmp.lt.s32.totalorder %s559_s17, %s1998_s13  ;;  %p2001_p2 = scmp.lt.s32.totalorder %s1999_s5, %s1992_s23 }
  0x53   : > { %p1995_p3 = pnand %p1993_p4, %p1925_p10 }
  0x54   : > { %s557_s4 = scalar_lea.hbm %s2665_s10, %s2323_s8  ;;  %p2002_p5 = por %p2001_p2, %p2000_p1 }
  0x55   : > { %p1996_p0 = pneg %p1995_p3 }
  0x57   : > { %p2003_p7 = pnand %p2002_p5, %p1996_p0 }
  0x59   : > { %2006 = shalt.err (!%p2003_p7)
}
  0x5a   : > { %1793 = dma.hbm_to_vmem [thread:$0]  (!%p2299_p12), %s557_s4, 256, %s559_s17, %s2335_s0, %s2153_s7, %s2153_s7, %s2154_s28  }
  0x5b   : > { %s2157_s27 = smov [#allocation6]   ;;  %s2666_s12 = sld [smem:[#allocation30_spill]] }
  0x5c   : > { %s458_s9 = sshll.u32 %s2157_s27, 4  ;;  %s459_s9 = int_to_ptr.vmem [resolvable:$true] %s458_s9 }
  0x5d   : > { %s2018_s23 = scalar_lea.vmem %s459_s9, 128  ;;  %p2026_p0 = scmp.lt.s32.totalorder %s459_s9, %s459_s9 }
  0x5e   : > { %p2019_p9 = scmp.ne.s32.totalorder %s459_s9, %s2018_s23  ;;  %p2027_p1 = scmp.lt.s32.totalorder %s2018_s23, %s2018_s23 }
  0x60   : > { %p2021_p4 = pnand %p2019_p9, %p1899_p13  ;;  %p2028_p2 = por %p2027_p1, %p2026_p0 }
  0x61   : > { %s584_s20 = scalar_lea.hbm %s2666_s12, %s2323_s8 }
  0x62   : > { %p2022_p3 = pneg %p2021_p4 }
  0x64   : > { %p2029_p5 = pnand %p2028_p2, %p2022_p3 }
  0x66   : > { %2032 = shalt.err (!%p2029_p5)
}
  0x67   : > { %s2667_s1 = sld [smem:[#allocation21_spill]]  ;;  %s578_s29 = scalar_lea.vmem [#allocation11], %s2318_s11 }
  0x68   : > { %s585_s13 = sshll.u32 %s578_s29, 4  ;;  %s2158_s27 = smov [#allocation11]   ;;  %s586_s13 = int_to_ptr.vmem [resolvable:$true] %s585_s13 }
  0x69   : > { %s2046_s5 = scalar_lea.vmem %s586_s13, 256  ;;  %s2051_s14 = sshll.u32 %s2158_s27, 4  ;;  %s2052_s14 = int_to_ptr.vmem [resolvable:$false] %s2051_s14 }
  0x6a   : > { %p2047_p7 = scmp.ne.s32.totalorder %s586_s13, %s2046_s5  ;;  %s2053_s24 = scalar_lea.vmem %s2052_s14, 512 }
  0x6b   : > { %p2054_p4 = scmp.lt.s32.totalorder %s586_s13, %s2052_s14  ;;  %p2055_p3 = scmp.lt.s32.totalorder %s2053_s24, %s2046_s5 }
  0x6c   : > { %p2049_p13 = pnand %p2047_p7, %p1925_p10 }
  0x6d   : > { %1783 = dma.hbm_to_vmem [thread:$0]  (!%p2295_p11), %s2667_s1, 128, %s459_s9, [#allocation7]  }
  0x6e   : > { %p2050_p9 = pneg %p2049_p13  ;;  %p2056_p0 = por %p2055_p3, %p2054_p4 }
  0x70   : > { %p2057_p1 = pnand %p2056_p0, %p2050_p9 }
  0x72   : > { %2060 = shalt.err (!%p2057_p1)
}
  0x73   : > { %1796 = dma.hbm_to_vmem [thread:$0]  (!%p2299_p12), %s584_s20, 256, %s586_s13, %s2335_s0, %s2153_s7, %s2153_s7, %s2154_s28  }
  0x74   : > { %603 = sbr.rel (%p2286_p8) target bundleno = 2467 (0x9a3), region = 76  ;;  %p2668_p11 = scmp.eq.s32.totalorder (!%p2286_p8), %s2270_s19, 0 }
  0x79   : > { %2110 = dma.done.wait (%p2668_p11), [#allocation4], 256   ;;  %p2669_p10 = pmov %p2668_p11 }
  0x7b   : > { %2112 = vsyncadd (%p2669_p10), [#allocation4], 4294967040  ;;  %p2670_p2 = pmov %p2669_p10 }
  0x7d   : > { %2114 = dma.done.wait (%p2670_p2), [#allocation7], 128   ;;  %p2671_p5 = pmov %p2670_p2 }
  0x7e   : > { %s613_s8 = sand.u32 1, %s2270_s19   ;;  %s615_s0 = sand.u32 1, %s2131_s30  }
  0x7f   : > { %2116 = vsyncadd (%p2671_p5), [#allocation7], 4294967168  ;;  %s2415_s26 = sshll.u32 %s615_s0, 4  ;;  %s614_s22 = scalar_lea.sflag [#allocation4], %s613_s8 }
  0x80   : > { %2118 = dma.done.wait (%p2281_p6), %s614_s22, 1024  }
  0x81   : > { %2120 = vsyncadd (%p2281_p6), %s614_s22, 4294966272  ;;  %p724_p8 = scmp.lt.s32.totalorder %s2139_s16, 1  ;;  %s2673_s11 = sld [smem:[#allocation25_spill]] }
  0x82   : > { %s2674_s22 = sld [smem:[#allocation26_spill]]  ;;  %s626_s5 = scalar_lea.vmem [#allocation9], %s2415_s26 }
  0x83   : > { %s2424_s28 = scalar_select %p724_p8, %s2139_s16, 1 }
  0x84   : > { %s2675_s1 = sld [smem:[#allocation27_spill]]  ;;  %s635_s27 = scalar_lea.vmem [#allocation10], %s2415_s26 }
  0x85   : > { %s2676_s23 = sld [smem:[#allocation29_spill]]  ;;  %s644_s14 = scalar_lea.vmem [#allocation11], %s2415_s26 }
  0x86   : > { %s2677_s29 = sld [smem:[#allocation31_spill]]  ;;  %p1647_p6 = scmp.ne.s32.totalorder %s2139_s16, 0 }
  0x87   : > { %s735_s25 = scalar_lea.vmem %s2673_s11, %s2424_s28 }
  0x88   : > { %s738_s9 = scalar_lea.vmem %s2674_s22, %s2424_s28  ;;  %753 = sbr.rel (%p1647_p6) target bundleno = 143 (0x8f), region = 104 }
  0x8a   : > { %s741_s21 = scalar_lea.vmem %s2675_s1, %s2424_s28 }
  0x8b   : > { %s744_s4 = scalar_lea.vmem %s2676_s23, %s2424_s28 }
  0x8c   : > { %s747_s13 = scalar_lea.vmem %s2677_s29, %s2424_s28 }
  0x8d   : > { %v754_v0 = vld [vmem:[#allocation3] sm:$0xff]  ;;  %vm756_vm0 = vcmask 261120   ;;  %v755_v1 = vld [vmem:[#allocation3 + $0x8] sm:$0xff] }
  0x8e   : > { %757 = vst.msk [vmem:[#allocation2] sm:$0xff] %vm756_vm0, %v754_v0  ;;  %758 = vst.msk [vmem:[#allocation2 + $0x8] sm:$0xff] %vm756_vm0, %v755_v1 }
  0x8f PF: > { %vm763_vm1 = vcmask 261120   ;;  %s2678_s1 = scalar_lea.vmem [#allocation8], %s2415_s26  ;;  %v2159_v17 = vmov 0.0   ;;  %vm2160_vm2 = vmmov 0   ;;  %s2680_s7 = scalar_lea.vmem %s2625_s2, %s2424_s28  ;;  %v898_v63 = vld [vmem:[#allocation6] sm:$0xff]  ;;  %vm997_vm7 = vcmask 64512  }
  0x90   : > { %v1865_v16 = vld [vmem:[%s2678_s1 + $0x8] sm:$0xff]   ;;  %1701 = vmatprep.subr.bf16.mxu0 %v2159_v17  ;;  %1705 = vmatprep.mubr.msk.bf16.mxu0 %vm2160_vm2, %v2159_v17  ;;  %s2679_s6 = smov %s2678_s1  ;;  %s2681_s11 = scalar_lea.vmem %s2626_s3, %s2424_s28  ;;  %vm1027_vm8 = vcmask 1043456  }
  0x91   : > { %1702 = vmatpush3.bf16.msra.mxu0 %v1865_v16  ;;  %v1866_v18 = vld [vmem:[%s2679_s6] sm:$0xff]   ;;  %1709 = vmatprep.subr.bf16.mxu1 %v2159_v17  ;;  %s2682_s22 = sld [smem:[#allocation23_spill]]  ;;  %s2161_s23 = smov 96  }
  0x92   : > { %1703 = vmatprep.subr.bf16.mxu0 %v2159_v17  ;;  %1711 = vmatprep.mubr.msk.bf16.mxu1 %vm2160_vm2, %v2159_v17  ;;  %v1648_v37 = vld [vmem:[%s2680_s7] ss:$0 sm:$0xff]  ;;  %s2162_s29 = smov 64   ;;  %p1672_p12 = scmp.ne.s32.totalorder %s2139_s16, 1 }
  0x93   : > { %v1649_v41 = vld [vmem:[%s2681_s11] ss:$0 sm:$0xff] }
  0x95   : > { %v2462_v2 = vld [vmem:[#allocation2] sm:$0xff]  ;;  %v2464_v3 = vld [vmem:[#allocation2 + $0x8] sm:$0xff]  ;;  %1704 = vmatpush3.bf16.msra.mxu0 %v1866_v18 }
  0x96   : > { %v764_v4 = vsel %vm763_vm1, %v2462_v2, 0.0  ;;  %v767_v5 = vsel %vm763_vm1, %v2464_v3, 0.0  ;;  %1715 = vmatprep.subr.bf16.mxu0 %v2159_v17 }
  0x97   : > { %765 = vadd.xlane.f32.xlu0 %v764_v4  ;;  %s2683_s20 = scalar_lea.vmem %s2682_s22, %s2424_s28 }
  0x98   : > { %v1650_v46 = vld [vmem:[%s2683_s20] ss:$0 sm:$0xff] }
  0x9b   : > { %768 = vadd.xlane.f32.xlu0 %v767_v5 }
 0x120   : > { %v766_v6 = vpop.xlane.xlu0 %765 }
 0x121   : > { %v771_v7 = vmul.f32 0.03125, %v766_v6 }
 0x123   : > { %v773_v8 = vsub.f32 %v2462_v2, %v771_v7 }
 0x124   : > { %v769_v9 = vpop.xlane.xlu0 %768 }
 0x125   : > { %v772_v10 = vmul.f32 0.03125, %v769_v9  ;;  %v775_v11 = vmul.f32 %v773_v8, %v773_v8 }
 0x127   : > { %v774_v12 = vsub.f32 %v2464_v3, %v772_v10  ;;  %v777_v13 = vsel %vm763_vm1, %v775_v11, 0.0 }
 0x128   : > { %778 = vadd.xlane.f32.xlu1 %v777_v13 }
 0x129   : > { %v776_v14 = vmul.f32 %v774_v12, %v774_v12 }
 0x12b   : > { %v780_v15 = vsel %vm763_vm1, %v776_v14, 0.0 }
 0x12c   : > { %781 = vadd.xlane.f32.xlu1 %v780_v15 }
 0x1b1   : > { %v779_v19 = vpop.xlane.xlu1 %778 }
 0x1b2   : > { %v784_v20 = vmul.f32 0.032258064, %v779_v19 }
 0x1b4   : > { %1873 = vrsqrt.f32 %v784_v20  ;;  %vm788_vm3 = vcmp.eq.f32.partialorder %v784_v20, inf  ;;  %v791_v25 = vand.u32 2147483648, %v784_v20  ;;  %vm790_vm4 = vcmp.eq.f32.partialorder %v784_v20, 0.0 }
 0x1b5   : > { %v782_v21 = vpop.xlane.xlu1 %781 }
 0x1b6   : > { %v785_v22 = vmul.f32 0.032258064, %v782_v21 }
 0x1b8   : > { %1875 = vrsqrt.f32 %v785_v22  ;;  %vm795_vm5 = vcmp.eq.f32.partialorder %v785_v22, inf  ;;  %v798_v31 = vand.u32 2147483648, %v785_v22  ;;  %vm797_vm6 = vcmp.eq.f32.partialorder %v785_v22, 0.0 }
 0x1c1   : > { %v1874_v23 = vpop.eup %1873 }
 0x1c2   : > { %v787_v24 = vmul.f32 %v1874_v23, %v784_v20 }
 0x1c4   : > { %v789_v26 = vsel %vm788_vm3, %v784_v20, %v787_v24 }
 0x1c5   : > { %v1876_v27 = vpop.eup %1875  ;;  %v792_v28 = vsel %vm790_vm4, %v791_v25, %v789_v26 }
 0x1c6   : > { %v800_v29 = vadd.f32 1e-06, %v792_v28  ;;  %v794_v30 = vmul.f32 %v1876_v27, %v785_v22 }
 0x1c8   : > { %1877 = vrcp.f32 %v800_v29  ;;  %v796_v32 = vsel %vm795_vm5, %v785_v22, %v794_v30 }
 0x1c9   : > { %v799_v33 = vsel %vm797_vm6, %v798_v31, %v796_v32 }
 0x1ca   : > { %v801_v34 = vadd.f32 1e-06, %v799_v33 }
 0x1cc   : > { %1879 = vrcp.f32 %v801_v34 }
 0x1d5   : > { %v1878_v35 = vpop.eup %1877 }
 0x1d6   : > { %v806_v36 = vmul.f32 %v1878_v35, %v773_v8 }
 0x1d8   : > { %v814_v40 = vmul.f32 %v1648_v37, %v806_v36 }
 0x1d9   : > { %v1880_v38 = vpop.eup %1879 }
 0x1da   : > { %v807_v39 = vmul.f32 %v1880_v38, %v774_v12  ;;  %v822_v43 = vadd.f32 %v1649_v41, %v814_v40  ;;  %v1868_v38 = vld [vmem:[%s626_s5] sm:$0xff]  }
 0x1dc   : > { %v815_v42 = vmul.f32 %v1648_v37, %v807_v39  ;;  %v1867_v37 = vld [vmem:[%s626_s5 + $0x8] sm:$0xff]  }
 0x1de   : > { %v823_v44 = vadd.f32 %v1649_v41, %v815_v42 }
 0x1e0   : > { %v828_v45 = vpack.c.bf16 %v823_v44, %v822_v43 }
 0x1e2   : > { %1706 = vmatmul.mubr.msk.bf16.vlgmr.msra.gmra.mxu0 %vm763_vm1, %v828_v45 }
 0x1e3   : > { %1717 = vmatprep.mubr.msk.bf16.mxu0 %vm2160_vm2, %v2159_v17 }
 0x2a2   : > { %v885_v47 = vpop.f32.mrf.mxu0 }
 0x2a3   : > { %v886_v48 = vadd.f32 %v1650_v46, %v885_v47 }
 0x2a4   : > { %v1707_v49 = vpop.f32.mrf.mxu0 }
 0x2a5   : > { %v896_v50 = vpack.c.bf16 %v886_v48, %v886_v48  ;;  %v892_v57 = vmul.f32 0.35355338, %v886_v48  ;;  %v1658_v48 = vld [vmem:[%s735_s25] ss:$0 sm:$0xff] }
 0x2a6   : > { %v888_v51 = vpop.f32.mrf.mxu0 }
 0x2a7   : > { %v889_v52 = vadd.f32 %v1650_v46, %v888_v51  ;;  %900 = vrot.lane.b32.xlu0 %v896_v50, %s2161_s23  ;;  %v894_v60 = vpack.c.bf16 %v892_v57, %v892_v57 }
 0x2a8   : > { %v1708_v53 = vpop.f32.mrf.mxu0 }
 0x2a9   : > { %v897_v54 = vpack.c.bf16 %v889_v52, %v889_v52  ;;  %v893_v61 = vmul.f32 0.35355338, %v889_v52 }
 0x2ab   : > { %949 = vrot.lane.b32.xlu1 %v897_v54, %s2161_s23  ;;  %v895_v62 = vpack.c.bf16 %v893_v61, %v893_v61 }
 0x319   : > { %v901_v55 = vpop.permute.xlu0 %900 }
 0x31a   : > { %v906_v56 = vsel %vm763_vm1, %v901_v55, 0 }
 0x31b   : > { %1710 = vmatpush3.bf16.xpose.msra.mxu1 %v906_v56 }
 0x31c   : > { %1721 = vmatprep.subr.bf16.mxu1 %v2159_v17 }
 0x31d   : > { %v950_v58 = vpop.permute.xlu1 %949 }
 0x31e   : > { %v955_v59 = vsel %vm763_vm1, %v950_v58, 0 }
 0x31f   : > { %1716 = vmatpush3.bf16.xpose.msra.mxu0 %v955_v59 }
 0x320   : > { %1727 = vmatprep.subr.bf16.mxu0 %v2159_v17 }
 0x322   : > { %1712 = vmatmul.mubr.msk.bf16.vlgmr.msra.gmra.mxu1 %vm763_vm1, %v894_v60 }
 0x323   : > { %1723 = vmatprep.mubr.msk.bf16.mxu1 %vm2160_vm2, %v2159_v17 }
 0x326   : > { %1718 = vmatmul.mubr.msk.bf16.vlgmr.msra.gmra.mxu0 %vm763_vm1, %v895_v62 }
 0x327   : > { %1729 = vmatprep.mubr.msk.bf16.mxu0 %vm2160_vm2, %v2159_v17 }
 0x3e2   : > { %v942_v0 = vpop.f32.mrf.mxu1 }
 0x3e3   : > { %v943_v1 = vadd.f32 %v942_v0, %v898_v63 }
 0x3e4   : > { %v1713_v4 = vpop.f32.mrf.mxu1 }
 0x3e5   : > { %v998_v5 = vsel %vm997_vm7, %v943_v1, -inf }
 0x3e6   : > { %v945_v6 = vpop.f32.mrf.mxu1  ;;  %999 = vmax.xlane.f32.xlu1 %v998_v5  ;;  %v991_v7 = vpop.f32.mrf.mxu0  ;;  %v1869_v5 = vld [vmem:[%s635_s27 + $0x8] sm:$0xff]  }
 0x3e7   : > { %v992_v8 = vadd.f32 %v991_v7, %v898_v63  ;;  %v1870_v6 = vld [vmem:[%s635_s27] sm:$0xff]  }
 0x3e8   : > { %v1714_v9 = vpop.f32.mrf.mxu1  ;;  %v1719_v10 = vpop.f32.mrf.mxu0 }
 0x3e9   : > { %v1001_v11 = vsel %vm997_vm7, %v992_v8, -inf }
 0x3ea   : > { %1002 = vmax.xlane.f32.xlu0 %v1001_v11  ;;  %v994_v12 = vpop.f32.mrf.mxu0 }
 0x3ec   : > { %v1720_v13 = vpop.f32.mrf.mxu0 }
 0x46f   : > { %v1000_v14 = vpop.xlane.xlu1 %999 }
 0x470   : > { %v1004_v15 = vsub.f32 %v943_v1, %v1000_v14 }
 0x472   : > { %v1006_v16 = vmul.f32 1.442695, %v1004_v15 }
 0x473   : > { %v1003_v18 = vpop.xlane.xlu0 %1002 }
 0x474   : > { %1881 = vpow2.f32 %v1006_v16  ;;  %v1005_v19 = vsub.f32 %v992_v8, %v1003_v18 }
 0x476   : > { %v1008_v20 = vmul.f32 1.442695, %v1005_v19 }
 0x478   : > { %1883 = vpow2.f32 %v1008_v20 }
 0x481   : > { %v1882_v21 = vpop.eup %1881 }
 0x482   : > { %v1010_v22 = vsel %vm997_vm7, %v1882_v21, 0.0 }
 0x483   : > { %1011 = vadd.xlane.f32.xlu0 %v1010_v22 }
 0x485   : > { %v1884_v23 = vpop.eup %1883 }
 0x486   : > { %v1013_v24 = vsel %vm997_vm7, %v1884_v23, 0.0 }
 0x487   : > { %1014 = vadd.xlane.f32.xlu1 %v1013_v24 }
 0x498   : > { %1071 = vrot.lane.b32.xlu1 %v897_v54, %s2162_s29 }
 0x499   : > { %1022 = vrot.lane.b32.xlu0 %v896_v50, %s2162_s29 }
 0x50c   : > { %v1012_v25 = vpop.xlane.xlu0 %1011 }
 0x50d   : > { %1885 = vrcp.f32 %v1012_v25 }
 0x510   : > { %v1015_v26 = vpop.xlane.xlu1 %1014  ;;  %v1023_v27 = vpop.permute.xlu0 %1022 }
 0x511   : > { %1887 = vrcp.f32 %v1015_v26  ;;  %v1029_v28 = vsel %vm1027_vm8, %v1023_v27, 0  ;;  %v1662_v26 = vld [vmem:[%s738_s9] ss:$0 sm:$0xff] }
 0x512   : > { %1722 = vmatpush3.bf16.msra.mxu1 %v1029_v28 }
 0x513   : > { %1733 = vmatprep.subr.bf16.mxu1 %v2159_v17 }
 0x514   : > { %v1072_v29 = vpop.permute.xlu1 %1071 }
 0x515   : > { %v1077_v30 = vsel %vm1027_vm8, %v1072_v29, 0 }
 0x516   : > { %1728 = vmatpush3.bf16.msra.mxu0 %v1077_v30  ;;  %v1663_v30 = vld [vmem:[%s741_s21] ss:$0 sm:$0xff] }
 0x517   : > { %1741 = vmatprep.subr.bf16.mxu0 %v2159_v17 }
 0x51a   : > { %v1886_v31 = vpop.eup %1885 }
 0x51b   : > { %v1018_v32 = vmul.f32 %v1886_v31, %v1882_v21 }
 0x51d   : > { %v1020_v33 = vpack.c.bf16 %v1018_v32, %v1018_v32 }
 0x51e   : > { %v1888_v34 = vpop.eup %1887 }
 0x51f   : > { %1724 = vmatmul.mubr.msk.bf16.vlgmr.msra.gmra.mxu1 %vm997_vm7, %v1020_v33  ;;  %v1019_v35 = vmul.f32 %v1888_v34, %v1884_v23 }
 0x520   : > { %1737 = vmatprep.mubr.msk.bf16.mxu1 %vm2160_vm2, %v2159_v17  ;;  %1734 = vmatpush3.bf16.msra.mxu1 %v1867_v37  ;;  %v1664_v37 = vld [vmem:[%s744_s4] ss:$0 sm:$0xff] }
 0x521   : > { %v1021_v36 = vpack.c.bf16 %v1019_v35, %v1019_v35  ;;  %1735 = vmatprep.subr.bf16.mxu1 %v2159_v17  ;;  %v1871_v35 = vld [vmem:[%s644_s14 + $0x8] sm:$0xff]  }
 0x523   : > { %1730 = vmatmul.mubr.msk.bf16.vlgmr.msra.gmra.mxu0 %vm997_vm7, %v1021_v36  ;;  %v1872_v36 = vld [vmem:[%s644_s14] sm:$0xff]  }
 0x524   : > { %1745 = vmatprep.mubr.msk.bf16.mxu0 %vm2160_vm2, %v2159_v17  ;;  %1736 = vmatpush3.bf16.msra.mxu1 %v1868_v38 }
 0x525   : > { %1749 = vmatprep.subr.bf16.mxu1 %v2159_v17  ;;  %1742 = vmatpush3.bf16.msra.mxu0 %v1869_v5 }
 0x526   : > { %1743 = vmatprep.subr.bf16.mxu0 %v2159_v17 }
 0x529   : > { %1744 = vmatpush3.bf16.msra.mxu0 %v1870_v6 }
 0x5df   : > { %v1065_v39 = vpop.f32.mrf.mxu1 }
 0x5e1   : > { %v1725_v40 = vpop.f32.mrf.mxu1 }
 0x5e3   : > { %v1068_v41 = vpop.f32.mrf.mxu1  ;;  %v1113_v42 = vpop.f32.mrf.mxu0 }
 0x5e4   : > { %v1123_v43 = vpack.c.bf16 %v1113_v42, %v1065_v39 }
 0x5e5   : > { %v1726_v44 = vpop.f32.mrf.mxu1  ;;  %v1731_v45 = vpop.f32.mrf.mxu0 }
 0x5e6   : > { %1738 = vmatmul.mubr.msk.bf16.vlgmr.msra.gmra.mxu1 %vm763_vm1, %v1123_v43 }
 0x5e7   : > { %v1116_v46 = vpop.f32.mrf.mxu0  ;;  %1753 = vmatprep.mubr.msk.bf16.mxu1 %vm2160_vm2, %v2159_v17  ;;  %1750 = vmatpush3.bf16.msra.mxu1 %v1871_v35 }
 0x5e8   : > { %1751 = vmatprep.subr.bf16.mxu1 %v2159_v17  ;;  %v1668_v17 = vld [vmem:[%s747_s13] ss:$0 sm:$0xff] }
 0x5e9   : > { %v1732_v47 = vpop.f32.mrf.mxu0 }
 0x5eb   : > { %1752 = vmatpush3.bf16.msra.mxu1 %v1872_v36 }
 0x6a6   : > { %v1180_v49 = vpop.f32.mrf.mxu1 }
 0x6a7   : > { %v1181_v50 = vadd.f32 %v1658_v48, %v1180_v49 }
 0x6a8   : > { %v1739_v51 = vpop.f32.mrf.mxu1 }
 0x6a9   : > { %v2541_v52 = vadd.f32 %v1181_v50, %v2462_v2 }
 0x6aa   : > { %v1183_v53 = vpop.f32.mrf.mxu1 }
 0x6ab   : > { %v1184_v54 = vadd.f32 %v1658_v48, %v1183_v53  ;;  %v1191_v55 = vsel %vm763_vm1, %v2541_v52, 0.0 }
 0x6ac   : > { %1192 = vadd.xlane.f32.xlu1 %v1191_v55  ;;  %v1740_v56 = vpop.f32.mrf.mxu1 }
 0x6ad   : > { %v2546_v57 = vadd.f32 %v1184_v54, %v2464_v3 }
 0x6af   : > { %v1194_v58 = vsel %vm763_vm1, %v2546_v57, 0.0 }
 0x6b0   : > { %1195 = vadd.xlane.f32.xlu0 %v1194_v58 }
 0x735   : > { %v1193_v59 = vpop.xlane.xlu1 %1192 }
 0x736   : > { %v1197_v60 = vmul.f32 0.03125, %v1193_v59 }
 0x738   : > { %v1199_v2 = vsub.f32 %v2541_v52, %v1197_v60 }
 0x739   : > { %v1196_v61 = vpop.xlane.xlu0 %1195 }
 0x73a   : > { %v1198_v62 = vmul.f32 0.03125, %v1196_v61  ;;  %v1201_v63 = vmul.f32 %v1199_v2, %v1199_v2 }
 0x73c   : > { %v1200_v0 = vsub.f32 %v2546_v57, %v1198_v62  ;;  %v1203_v1 = vsel %vm763_vm1, %v1201_v63, 0.0 }
 0x73d   : > { %1204 = vadd.xlane.f32.xlu0 %v1203_v1 }
 0x73e   : > { %v1202_v4 = vmul.f32 %v1200_v0, %v1200_v0 }
 0x740   : > { %v1206_v3 = vsel %vm763_vm1, %v1202_v4, 0.0 }
 0x741   : > { %1207 = vadd.xlane.f32.xlu1 %v1206_v3 }
 0x7c6   : > { %v1205_v7 = vpop.xlane.xlu0 %1204 }
 0x7c7   : > { %v1209_v8 = vmul.f32 0.032258064, %v1205_v7 }
 0x7c9   : > { %1889 = vrsqrt.f32 %v1209_v8  ;;  %vm1213_vm9 = vcmp.eq.f32.partialorder %v1209_v8, inf  ;;  %v1216_v13 = vand.u32 2147483648, %v1209_v8  ;;  %vm1215_vm10 = vcmp.eq.f32.partialorder %v1209_v8, 0.0 }
 0x7ca   : > { %v1208_v9 = vpop.xlane.xlu1 %1207 }
 0x7cb   : > { %v1210_v10 = vmul.f32 0.032258064, %v1208_v9 }
 0x7cd   : > { %1891 = vrsqrt.f32 %v1210_v10  ;;  %vm1220_vm11 = vcmp.eq.f32.partialorder %v1210_v10, inf  ;;  %v1223_v20 = vand.u32 2147483648, %v1210_v10  ;;  %vm1222_vm12 = vcmp.eq.f32.partialorder %v1210_v10, 0.0 }
 0x7d6   : > { %v1890_v11 = vpop.eup %1889 }
 0x7d7   : > { %v1212_v12 = vmul.f32 %v1890_v11, %v1209_v8 }
 0x7d9   : > { %v1214_v14 = vsel %vm1213_vm9, %v1209_v8, %v1212_v12 }
 0x7da   : > { %v1892_v15 = vpop.eup %1891  ;;  %v1217_v16 = vsel %vm1215_vm10, %v1216_v13, %v1214_v14 }
 0x7db   : > { %v1225_v18 = vadd.f32 1e-06, %v1217_v16  ;;  %v1219_v19 = vmul.f32 %v1892_v15, %v1210_v10 }
 0x7dd   : > { %1893 = vrcp.f32 %v1225_v18  ;;  %v1221_v21 = vsel %vm1220_vm11, %v1210_v10, %v1219_v19 }
 0x7de   : > { %v1224_v22 = vsel %vm1222_vm12, %v1223_v20, %v1221_v21 }
 0x7df   : > { %v1226_v23 = vadd.f32 1e-06, %v1224_v22 }
 0x7e1   : > { %1895 = vrcp.f32 %v1226_v23 }
 0x7ea   : > { %v1894_v24 = vpop.eup %1893 }
 0x7eb   : > { %v1231_v25 = vmul.f32 %v1894_v24, %v1199_v2 }
 0x7ed   : > { %v1239_v29 = vmul.f32 %v1662_v26, %v1231_v25 }
 0x7ee   : > { %v1896_v27 = vpop.eup %1895 }
 0x7ef   : > { %v1232_v28 = vmul.f32 %v1896_v27, %v1200_v0  ;;  %v1247_v32 = vadd.f32 %v1663_v30, %v1239_v29 }
 0x7f1   : > { %v1240_v31 = vmul.f32 %v1662_v26, %v1232_v28 }
 0x7f3   : > { %v1248_v33 = vadd.f32 %v1663_v30, %v1240_v31 }
 0x7f5   : > { %v1253_v34 = vpack.c.bf16 %v1248_v33, %v1247_v32 }
 0x7f7   : > { %1746 = vmatmul.mubr.msk.bf16.vlgmr.msra.gmra.mxu0 %vm763_vm1, %v1253_v34 }
 0x8b7   : > { %v1310_v38 = vpop.f32.mrf.mxu0 }
 0x8b8   : > { %v1311_v40 = vadd.f32 %v1664_v37, %v1310_v38 }
 0x8b9   : > { %v1747_v39 = vpop.f32.mrf.mxu0 }
 0x8ba   : > { %v1317_v44 = vmax.f32 %v1311_v40, 0.0 }
 0x8bb   : > { %v1313_v41 = vpop.f32.mrf.mxu0 }
 0x8bc   : > { %v1314_v42 = vadd.f32 %v1664_v37, %v1313_v41 }
 0x8bd   : > { %v1748_v43 = vpop.f32.mrf.mxu0 }
 0x8be   : > { %v1318_v45 = vmax.f32 %v1314_v42, 0.0 }
 0x8c0   : > { %v1323_v46 = vpack.c.bf16 %v1318_v45, %v1317_v44 }
 0x8c2   : > { %1754 = vmatmul.mubr.msk.bf16.vlgmr.msra.gmra.mxu1 %vm763_vm1, %v1323_v46 }
 0x982   : > { %v1380_v47 = vpop.f32.mrf.mxu1 }
 0x983   : > { %v1381_v48 = vadd.f32 %v1668_v17, %v1380_v47 }
 0x984   : > { %v1755_v49 = vpop.f32.mrf.mxu1 }
 0x985   : > { %v1387_v50 = vadd.f32 %v1381_v48, %v2541_v52 }
 0x986   : > { %v1383_v51 = vpop.f32.mrf.mxu1 }
 0x987   : > { %1389 = vst.msk [vmem:[#allocation2] sm:$0xff] %vm763_vm1, %v1387_v50  ;;  %v1384_v53 = vadd.f32 %v1668_v17, %v1383_v51  ;;  %1394 = sbr.rel (%p1672_p12) target bundleno = 2445 (0x98d), region = 108 }
 0x988   : > { %v1756_v54 = vpop.f32.mrf.mxu1 }
 0x989   : > { %v1388_v55 = vadd.f32 %v1384_v53, %v2546_v57 }
 0x98b   : > { %1390 = vst.msk [vmem:[#allocation2 + $0x8] sm:$0xff] %vm763_vm1, %v1388_v55 }
 0x98c   : > { %1395 = vst.msk [vmem:[#allocation12] sm:$0xff] %vm763_vm1, %v1387_v50  ;;  %1396 = vst.msk [vmem:[#allocation12 + $0x8] sm:$0xff] %vm763_vm1, %v1388_v55 }
 0x98d PF: > { %p1802_p7 = scmp.eq.s32.totalorder %s2270_s19, 1  ;;  %s2163_s28 = smov [#allocation12]  }
 0x98e   : > { %s1406_s4 = sshll.u32 %s2163_s28, 4  ;;  %s1407_s4 = int_to_ptr.vmem [resolvable:$true] %s1406_s4 }
 0x98f   : > { %s2061_s13 = scalar_lea.vmem %s1407_s4, 256  ;;  %p2068_p3 = scmp.lt.s32.totalorder %s1407_s4, %s1407_s4 }
 0x990   : > { %p2062_p13 = scmp.ne.s32.totalorder %s1407_s4, %s2061_s13  ;;  %p2069_p0 = scmp.lt.s32.totalorder %s2061_s13, %s2061_s13 }
 0x992   : > { %p2063_p9 = pnand %p2062_p13, %p1802_p7  ;;  %p2070_p1 = por %p2069_p0, %p2068_p3 }
 0x994   : > { %p2064_p4 = pneg %p2063_p9 }
 0x996   : > { %p2071_p11 = pnand %p2070_p1, %p2064_p4 }
 0x998   : > { %2074 = shalt.err (!%p2071_p11)
}
 0x999   : > { %s2164_s16 = smov 128   ;;  %s2165_s8 = smov 8  }
 0x99a   : > { %s2689_s20 = sld [smem:[#allocation32_spill]] }
 0x9a0   : > { %1774 = dma.vmem_to_hbm [thread:$0]  (%p1802_p7), %s1407_s4, 256, %s2689_s20, [#allocation5], %s2164_s16, %s2164_s16, %s2165_s8  }
 0x9a1   : > { %2122 = dma.done.wait (%p1802_p7), [#allocation5], 256  }
 0x9a2   : > { %2124 = vsyncadd (%p1802_p7), [#allocation5], 4294967040 }
 0x9a3 PF: > { %s27_s18 = sadd.s32 1, %s2147_s18   ;;  %s2690_s23 = sld [smem:[#allocation19_spill]] }
 0x9a4   : > { %p24_p10 = scmp.ge.s32.totalorder %s27_s18, 4   ;;  %s2691_s16 = sld [smem:[#allocation17_spill]] }
 0x9a5   : > { %s2692_s17 = sld [smem:[#allocation18_spill]]  ;;  %s2693_s29 = smov %s2131_s30 }
 0x9a6   : > { %s2694_s30 = smov %s2135_s15  ;;  %26 = sbr.rel (!%p24_p10) target bundleno = 19 (0x13), region = 187 }
 0x9a9   : > { %s2695_s15 = smov %s2690_s23 }
 0x9ab   :  { %1422 = vsyncpa [#allocation4], 1 }
 0x9ac   :  { %1424 = vsyncpa [#allocation4 + $0x1], 1 }
 0x9ad   :  { %1425 = vsyncpa [#allocation7], 1 }
 0x9ae   :  { %1426 = vsyncpa [#allocation5], 1 }
 0x9af   :  { %1428 = vsyncpa [#allocation5 + $0x1], 1 }

</bundles_post_ra>
